<compile_context>
chip_gen: v6e
topology: v6e:2x2x1
jax: 0.10.0
libtpu: 0.0.40
codegen_flags: <defaults>
</compile_context>

<pallas_src>
import jax
import jax.numpy as jnp
from jax.experimental import pallas as pl
from jax.experimental.pallas import tpu as pltpu


def body_kernel(x_hbm_ref, o_hbm_ref, copy_sem):
    # Abstract body forward == identity postprocessing of the embedder output.
    # One direct HBM->HBM DMA: no VMEM staging, no grid, no per-step overhead.
    cp = pltpu.make_async_copy(x_hbm_ref, o_hbm_ref, copy_sem)
    cp.start()
    cp.wait()


@jax.jit
def body_forward(embedder_output: jax.Array) -> jax.Array:
    """Pallas implementation of BodyAbstract.forward (identity contract)."""
    shape = embedder_output.shape
    dtype = embedder_output.dtype
    nbytes = embedder_output.size * jnp.dtype(dtype).itemsize

    return pl.pallas_call(
        body_kernel,
        out_shape=jax.ShapeDtypeStruct(shape, dtype),
        in_specs=[pl.BlockSpec(memory_space=pl.ANY)],   # raw HBM ref, no auto-DMA
        out_specs=pl.BlockSpec(memory_space=pl.ANY),    # raw HBM ref, no auto-DMA
        scratch_shapes=[pltpu.SemaphoreType.DMA(())],
        cost_estimate=pl.CostEstimate(
            flops=0, transcendentals=0, bytes_accessed=2 * nbytes),
    )(embedder_output)


if __name__ == "__main__":
    key = jax.random.PRNGKey(0)
    # Small embedder-output shape: batch=2, seq=8, hidden=32.
    x = jax.random.normal(key, (2, 8, 32), dtype=jnp.float32)

    y = jax.block_until_ready(body_forward(x))

    x_host = jax.device_get(x)
    y_host = jax.device_get(y)
    assert y_host.shape == x_host.shape, (y_host.shape, x_host.shape)
    assert y_host.dtype == x_host.dtype, (y_host.dtype, x_host.dtype)
    assert (y_host == x_host).all(), "identity pass-through mismatch"

    print("KERNEL_OK")
</pallas_src>

<mosaic_0001>
module attributes {stable_mosaic.version = 11 : i64} {
  func.func @body_kernel(%arg0: memref<2x8x32xf32, #tpu.memory_space<any>>, %arg1: memref<2x8x32xf32, #tpu.memory_space<any>>, %arg2: memref<!tpu.dma_semaphore, #tpu.memory_space<semaphore_mem>>) attributes {dimension_semantics = [], scalar_prefetch = 0 : i64, scratch_operands = 1 : i64, tpu.core_type = #tpu.core_type<tc>} {
    tpu.enqueue_dma source(%arg0 : memref<2x8x32xf32, #tpu.memory_space<any>>) target(%arg1 : memref<2x8x32xf32, #tpu.memory_space<any>>) target_semaphore(%arg2 : memref<!tpu.dma_semaphore, #tpu.memory_space<semaphore_mem>>)
    tpu.wait_dma2 semaphore(%arg2 : memref<!tpu.dma_semaphore, #tpu.memory_space<semaphore_mem>>) src(%arg0 : memref<2x8x32xf32, #tpu.memory_space<any>>) dst(%arg1 : memref<2x8x32xf32, #tpu.memory_space<any>>)
    return
  }
}

</mosaic_0001>

<bundles_post_ra>
// kernel: body_forward.1
= control target key start
LH: loop header
LB: loop body
LE: loop exit
PB: predicated region body
PF: predicated region fallthrough
CT: control target
= control target key end

     0   :  { %s29_s6 = smov [#allocation2]   ;;  %s30_s7 = smov 131072   ;;  %s48_s0 = inlined_call_operand.hbm [shape: f32[2,8,32], index: 0, kind: input, shape index: {}]   ;;  %s49_s1 = inlined_call_operand.hbm [shape: f32[2,8,32], index: 1, kind: output, shape index: {}]  }
   0x1   :  { %s31_s8 = smov 0  }
   0x2   :  { %12 = dma.general %s48_s0, 256, %s49_s1, %s29_s6, %s30_s7, [#allocation4], %s31_s8, 0  }
   0x3   :  { %27 = dma.done.wait [#allocation2], 256 }
   0x4   :  { %28 = vsyncadd [#allocation2], 4294967040 }
   0x5   :  { %17 = vsyncmov [#allocation2] }
   0x8   :  { %s18_s13 = vpop.sfrf %17 }
   0x9   :  { %p23_p0 = scmp.ne.s32.totalorder %s18_s13, 0 }
   0xb   :  { %22 = shalt.err (%p23_p0)  }

</bundles_post_ra>
